<compile_context>
chip_gen: v7x
topology: tpu7x:2x2x1
jax: 0.10.0
libtpu: 0.0.40
codegen_flags: <defaults>
</compile_context>

<pallas_src>
import functools

import jax
import jax.numpy as jnp
from jax.experimental import pallas as pl
from jax.experimental.pallas import tpu as pltpu


def _cdiv(a, b):
    return -(-a // b)


def _ce_kernel(logits_ref, tgt_ref, out_ref, *, hw_total, t_hw, tiles_per_p, need_mask):
    p = pl.program_id(1)   # spatial-tile group ("parallel"; feeds the 2nd TC on v7x)
    j = pl.program_id(2)   # spatial tile within the group (innermost reduction axis)

    @pl.when(j == 0)
    def _():
        out_ref[...] = jnp.zeros_like(out_ref)

    x = logits_ref[0]      # (C, t_hw) in storage dtype (f32 or bf16), classes on sublanes
    t = tgt_ref[0]         # (1, t_hw) int32 labels

    # class index per sublane; a (C, 1) iota broadcast against t avoids a (C, t_hw)
    # int32 block in VMEM
    cls = jax.lax.broadcasted_iota(jnp.int32, (x.shape[0], 1), 0)

    # numerically stable, single shifted pass: the running max m cancels between the
    # logsumexp and the target-logit term
    m = jnp.max(x, axis=0, keepdims=True)                            # (1, t_hw), storage dtype
    shifted = x.astype(jnp.float32) - m.astype(jnp.float32)          # (C, t_hw) f32
    sum_exp = jnp.sum(jnp.exp(shifted), axis=0, keepdims=True)       # (1, t_hw) f32
    tgt_shifted = jnp.sum(jnp.where(cls == t, shifted, 0.0),
                          axis=0, keepdims=True)                     # (1, t_hw) f32
    loss = jnp.log(sum_exp) - tgt_shifted                            # (1, t_hw) f32

    if need_mask:
        # logical tile index (may exceed the real tile count for padded dummy tiles)
        tile = p * tiles_per_p + j
        is_partial = (tile + 1) * t_hw > hw_total

        @pl.when(is_partial)
        def _():
            pos = jax.lax.broadcasted_iota(jnp.int32, loss.shape, 1)
            valid = tile * t_hw + pos < hw_total
            # select (NOT a multiply): the pad region may hold NaN/Inf garbage
            out_ref[0] += jnp.where(valid, loss, 0.0)

        @pl.when(jnp.logical_not(is_partial))
        def _():
            out_ref[0] += loss
    else:
        out_ref[0] += loss


def _pick_tile(hw, c, itemsize, *, target_bytes=4 << 20):
    """Spatial (lane) tile width for one (C, t_hw) logits block.

    Preference order: (a) the full extent if the whole row fits the ~4 MiB budget,
    (b) a multiple-of-128 divisor of hw (no remainder mask) that is at least half the
    budgeted width, (c) the largest multiple of 128 within budget.
    """
    row_bytes = max(1, c * itemsize)
    if hw <= 128 or hw * row_bytes <= target_bytes:
        return hw  # full extent is always a legal lane block
    t_max = max(128, (target_bytes // row_bytes) // 128 * 128)
    t_max = min(t_max, (hw // 128) * 128)
    m = t_max // 128
    while m >= 1 and m * 128 * 2 >= t_max:
        t = m * 128
        if hw % t == 0:
            return t
        m -= 1
    return t_max


def cross_entropy_loss(pred, target, *, t_hw=None):
    """pred: (N, C, H, W) float logits; target: (N, H, W) int labels in [0, C)."""
    N, C, H, W = pred.shape
    HW = H * W

    # free views: no transpose, no extra HBM pass, keep the storage dtype
    logits = pred.reshape(N, C, HW)
    tgt = target.reshape(N, 1, HW).astype(jnp.int32)

    if t_hw is None:
        t_hw = _pick_tile(HW, C, jnp.dtype(pred.dtype).itemsize)
    num_tiles = _cdiv(HW, t_hw)

    # v7x has 2 TensorCores and only "parallel" grid axes are sharded across them:
    # when the batch axis cannot feed both cores, split the spatial tiles instead.
    P = 2 if (N == 1 and num_tiles >= 2) else 1
    tiles_per_p = _cdiv(num_tiles, P)
    padded = P * tiles_per_p != num_tiles
    need_mask = (HW % t_hw != 0) or padded

    def tile_idx(p, j):
        idx = p * tiles_per_p + j
        if padded:
            # dummy tiles re-read the last real tile (in-bounds) and are fully masked
            idx = jnp.minimum(idx, num_tiles - 1)
        return idx

    kernel = functools.partial(_ce_kernel, hw_total=HW, t_hw=t_hw,
                               tiles_per_p=tiles_per_p, need_mask=need_mask)

    partial_sums = pl.pallas_call(
        kernel,
        out_shape=jax.ShapeDtypeStruct((N * P, 1, t_hw), jnp.float32),
        grid_spec=pltpu.PrefetchScalarGridSpec(
            num_scalar_prefetch=0,
            grid=(N, P, tiles_per_p),
            in_specs=[
                pl.BlockSpec((1, C, t_hw), lambda n, p, j: (n, 0, tile_idx(p, j))),
                pl.BlockSpec((1, 1, t_hw), lambda n, p, j: (n, 0, tile_idx(p, j))),
            ],
            out_specs=pl.BlockSpec((1, 1, t_hw), lambda n, p, j: (n * P + p, 0, 0)),
        ),
        compiler_params=pltpu.CompilerParams(
            dimension_semantics=("parallel", "parallel", "arbitrary"),
            vmem_limit_bytes=48 << 20,  # fits v7x's 64 MiB physical VMEM; fine on v5e/v6e
        ),
    )(logits, tgt)

    # finish the mean: one tiny XLA reduction over the lane-dense per-(n, p) partials
    return jnp.sum(partial_sums) / jnp.float32(N * HW)


def _reference_ce(pred, target):
    # pure-JAX reference of torch.nn.CrossEntropyLoss()(pred, target), mean reduction
    N, C, H, W = pred.shape
    logits = jnp.transpose(pred, (0, 2, 3, 1)).reshape(-1, C).astype(jnp.float32)
    tgt = target.reshape(-1)
    lse = jax.nn.logsumexp(logits, axis=-1)
    tgt_logit = jnp.take_along_axis(logits, tgt[:, None], axis=-1)[:, 0]
    return jnp.mean(lse - tgt_logit)


if __name__ == "__main__":
    key = jax.random.PRNGKey(0)

    def check(n, c, h, w, t_hw=None):
        k1, k2 = jax.random.split(jax.random.fold_in(key, n * 1000 + c * 100 + h + w))
        pred = jax.random.normal(k1, (n, c, h, w), dtype=jnp.float32)
        target = jax.random.randint(k2, (n, h, w), 0, c, dtype=jnp.int32)
        out = jax.block_until_ready(cross_entropy_loss(pred, target, t_hw=t_hw))
        ref = _reference_ce(pred, target)
        assert jnp.allclose(out, ref, rtol=1e-5, atol=1e-5), (n, c, h, w, t_hw, out, ref)

    # module's nominal small shape: single full-extent tile, grid (N, 1, 1)
    check(2, 4, 16, 16)
    # N == 1: spatial tiles split across the second "parallel" axis (dual-TC path)
    check(1, 4, 16, 32, t_hw=128)   # even tile count, no mask
    check(1, 4, 16, 24, t_hw=128)   # odd tile count -> clamped dummy tile, masked
    # H*W not a multiple of the tile -> masked remainder tile
    check(2, 3, 10, 20, t_hw=128)

    print("KERNEL_OK")
</pallas_src>

<mosaic_0001>
module attributes {stable_mosaic.version = 11 : i64} {
  func.func @_ce_kernel(%arg0: i32, %arg1: i32, %arg2: i32, %arg3: memref<1x4x256xf32, #tpu.memory_space<vmem>>, %arg4: memref<1x1x256xi32, #tpu.memory_space<vmem>>, %arg5: memref<1x1x256xf32, #tpu.memory_space<vmem>>) attributes {dimension_semantics = [#tpu.dimension_semantics<parallel>, #tpu.dimension_semantics<parallel>, #tpu.dimension_semantics<arbitrary>], iteration_bounds = array<i64: 2, 1, 1>, scalar_prefetch = 0 : i64, scratch_operands = 0 : i64, tpu.core_type = #tpu.core_type<tc>, window_params = [{transform_indices = @transform_0, window_bounds = array<i64: 1, 4, 256>}, {transform_indices = @transform_1, window_bounds = array<i64: 1, 1, 256>}, {transform_indices = @transform_2, window_bounds = array<i64: 1, 1, 256>}]} {
    %c0_i32 = arith.constant 0 : i32
    %0 = arith.cmpi eq, %arg2, %c0_i32 : i32
    %1 = arith.extui %0 : i1 to i32
    %c0_i32_0 = arith.constant 0 : i32
    %2 = arith.cmpi ne, %1, %c0_i32_0 : i32
    scf.if %2 {
      %cst_15 = arith.constant 0.000000e+00 : f32
      %30 = vector.broadcast %cst_15 : f32 to vector<1x1x256xf32>
      %c0_16 = arith.constant 0 : index
      %c0_17 = arith.constant 0 : index
      %c0_18 = arith.constant 0 : index
      %31 = vector.load %arg5[%c0_16, %c0_17, %c0_18] : memref<1x1x256xf32, #tpu.memory_space<vmem>>, vector<1x1x256xf32>
      tpu.vector_store %arg5[%c0_16, %c0_17, %c0_18], %30 {strides = array<i32>} : memref<1x1x256xf32, #tpu.memory_space<vmem>>, vector<1x1x256xf32>,
    } else {
    }
    %c0 = arith.constant 0 : index
    %c0_1 = arith.constant 0 : index
    %c0_2 = arith.constant 0 : index
    %3 = vector.load %arg3[%c0, %c0_1, %c0_2] : memref<1x4x256xf32, #tpu.memory_space<vmem>>, vector<1x4x256xf32>
    %4 = vector.shape_cast %3 : vector<1x4x256xf32> to vector<4x256xf32>
    %c0_3 = arith.constant 0 : index
    %c0_4 = arith.constant 0 : index
    %c0_5 = arith.constant 0 : index
    %5 = vector.load %arg4[%c0_3, %c0_4, %c0_5] : memref<1x1x256xi32, #tpu.memory_space<vmem>>, vector<1x1x256xi32>
    %6 = vector.shape_cast %5 : vector<1x1x256xi32> to vector<1x256xi32>
    %7 = tpu.iota {dimensions = array<i32: 0>} : vector<4x1xi32>
    %cst = arith.constant dense<0xFF800000> : vector<256xf32>
    %8 = vector.multi_reduction <maximumf>, %4, %cst [0] : vector<4x256xf32> to vector<256xf32>
    %9 = vector.shape_cast %8 : vector<256xf32> to vector<1x256xf32>
    %10 = vector.broadcast %9 : vector<1x256xf32> to vector<4x256xf32>
    %11 = arith.subf %4, %10 : vector<4x256xf32>
    %12 = math.exp %11 : vector<4x256xf32>
    %cst_6 = arith.constant dense<0.000000e+00> : vector<256xf32>
    %13 = vector.multi_reduction <add>, %12, %cst_6 [0] : vector<4x256xf32> to vector<256xf32>
    %14 = vector.shape_cast %13 : vector<256xf32> to vector<1x256xf32>
    %15 = vector.broadcast %7 : vector<4x1xi32> to vector<4x256xi32>
    %16 = vector.broadcast %6 : vector<1x256xi32> to vector<4x256xi32>
    %17 = arith.cmpi eq, %15, %16 : vector<4x256xi32>
    %cst_7 = arith.constant 0.000000e+00 : f32
    %18 = vector.broadcast %cst_7 : f32 to vector<4x256xf32>
    %19 = arith.select %17, %11, %18 : vector<4x256xi1>, vector<4x256xf32>
    %cst_8 = arith.constant dense<0.000000e+00> : vector<256xf32>
    %20 = vector.multi_reduction <add>, %19, %cst_8 [0] : vector<4x256xf32> to vector<256xf32>
    %21 = vector.shape_cast %20 : vector<256xf32> to vector<1x256xf32>
    %22 = math.log %14 : vector<1x256xf32>
    %23 = arith.subf %22, %21 : vector<1x256xf32>
    %c0_9 = arith.constant 0 : index
    %c0_10 = arith.constant 0 : index
    %c0_11 = arith.constant 0 : index
    %24 = vector.load %arg5[%c0_9, %c0_10, %c0_11] : memref<1x1x256xf32, #tpu.memory_space<vmem>>, vector<1x1x256xf32>
    %25 = vector.shape_cast %24 : vector<1x1x256xf32> to vector<1x256xf32>
    %26 = arith.addf %25, %23 : vector<1x256xf32>
    %c0_12 = arith.constant 0 : index
    %c0_13 = arith.constant 0 : index
    %c0_14 = arith.constant 0 : index
    %27 = vector.load %arg5[%c0_12, %c0_13, %c0_14] : memref<1x1x256xf32, #tpu.memory_space<vmem>>, vector<1x1x256xf32>
    %28 = vector.shape_cast %27 : vector<1x1x256xf32> to vector<1x256xf32>
    %29 = vector.shape_cast %26 : vector<1x256xf32> to vector<1x1x256xf32>
    tpu.vector_store %arg5[%c0_12, %c0_13, %c0_14], %29 {strides = array<i32>} : memref<1x1x256xf32, #tpu.memory_space<vmem>>, vector<1x1x256xf32>,
    return
  }
  func.func @transform_0(%arg0: i32, %arg1: i32, %arg2: i32) -> (i32, i32, i32) {
    %c1_i32 = arith.constant 1 : i32
    %0 = arith.muli %arg1, %c1_i32 : i32
    %1 = arith.addi %0, %arg2 : i32
    %c0_i32 = arith.constant 0 : i32
    %c0_i32_0 = arith.constant 0 : i32
    return %arg0, %c0_i32, %1 : i32, i32, i32
  }
  func.func @transform_1(%arg0: i32, %arg1: i32, %arg2: i32) -> (i32, i32, i32) {
    %c1_i32 = arith.constant 1 : i32
    %0 = arith.muli %arg1, %c1_i32 : i32
    %1 = arith.addi %0, %arg2 : i32
    %c0_i32 = arith.constant 0 : i32
    %c0_i32_0 = arith.constant 0 : i32
    return %arg0, %c0_i32, %1 : i32, i32, i32
  }
  func.func @transform_2(%arg0: i32, %arg1: i32, %arg2: i32) -> (i32, i32, i32) {
    %c1_i32 = arith.constant 1 : i32
    %0 = arith.muli %arg0, %c1_i32 : i32
    %1 = arith.addi %0, %arg1 : i32
    %c0_i32 = arith.constant 0 : i32
    %c0_i32_0 = arith.constant 0 : i32
    %c0_i32_1 = arith.constant 0 : i32
    return %1, %c0_i32, %c0_i32_0 : i32, i32, i32
  }
}

</mosaic_0001>

<bundles_post_ra>
// kernel: tpu_custom_call.1
= control target key start
LH: loop header
LB: loop body
LE: loop exit
PB: predicated region body
PF: predicated region fallthrough
CT: control target
= control target key end

     0   :  { %7 = vsyncpa [#allocation3], 0  ;;  %s983_s0 = inlined_call_operand.hbm [shape: f32[2,4,256], index: 0, kind: input, shape index: {}]   ;;  %s984_s1 = inlined_call_operand.hbm [shape: s32[2,1,256], index: 1, kind: input, shape index: {}]   ;;  %s985_s2 = inlined_call_operand.hbm [shape: f32[2,1,256], index: 2, kind: output, shape index: {}]  }
   0x1   :  { %9 = vsyncpa [#allocation3 + $0x1], 0 }
   0x2   :  { %10 = vsyncpa [#allocation6], 0 }
   0x3   :  { %12 = vsyncpa [#allocation6 + $0x1], 0 }
   0x4   :  { %13 = vsyncpa [#allocation4], 0 }
   0x5   :  { %15 = vsyncpa [#allocation4 + $0x1], 0  ;;  %s748_s9 = smov 0   ;;  %s750_s10 = smov 0  }
   0x6   :  { %s752_s11 = smov 0   ;;  %s754_s12 = smov 0  }
   0x7   :  { %s756_s13 = smov 0   ;;  %s758_s14 = smov 0  }
   0x8 LB: > { %s482_s15 = sadd.s32 4294967295, %s726_s14   ;;  %s483_s16 = sadd.s32 4294967294, %s726_s14   ;;  %s726_s14 = sphi %s758_s14, %s21_s14   ;;  %s722_s13 = sphi %s756_s13, %s1007_s13   ;;  %s718_s12 = sphi %s754_s12, %s1006_s12   ;;  %s714_s11 = sphi %s752_s11, %s1005_s11   ;;  %s710_s10 = sphi %s750_s10, %s1004_s10   ;;  %s706_s9 = sphi %s748_s9, %s1003_s9  }
   0x9   : > { %s40_s17 = sadd.s32 1, %s722_s13  ;;  %s51_s18 = sadd.s32 1, %s714_s11 }
   0xa   : > { %p42_p0 = scmp.ge.s32.totalorder %s40_s17, 2  ;;  %p58_p1 = scmp.ne.s32.totalorder %s714_s11, %s710_s10 }
   0xb   : > { %p59_p2 = scmp.eq.s32.totalorder %s726_s14, 0  ;;  %p64_p3 = scmp.ne.s32.totalorder %s710_s10, %s706_s9 }
   0xc   : > { %s1009_s17 = smov (%p42_p0, %s40_s17), 0  ;;  %p65_p5 = scmp.eq.s32.totalorder %s482_s15, 0 }
   0xd   : > { %p789_p4 = por %p59_p2, %p58_p1  ;;  %s46_s20 = ssub.s32 %s722_s13, %s1009_s17 }
   0xe   : > { %p120_p6 = scmp.eq.s32.totalorder %s482_s15, 1  ;;  %p49_p7 = scmp.eq.s32.totalorder %s46_s20, 0 }
   0xf   : > { %p795_p8 = por %p65_p5, %p64_p3  ;;  %p126_p10 = scmp.eq.s32.totalorder %s483_s16, 1 }
  0x10   : > { %p799_p9 = por %p120_p6, %p58_p1  ;;  %p521_p13 = scmp.lt.s32.totalorder %s726_s14, 2 }
  0x11   : > { %s989_s21 = scalar_select %p795_p8, 1, 0 }
  0x12   : > { %s990_s22 = scalar_select %p799_p9, 1, 0 }
  0x13   : > { %s804_s23 = scalar_select %p49_p7, %s714_s11, %s51_s18  }
  0x14   : > { %p806_p11 = por %p126_p10, %p64_p3  ;;  %s813_s25 = sand.u32 1, %s714_s11  }
  0x15   : > { %s486_s26 = sshll.u32 %s813_s25, 3  ;;  %s501_s27 = sshll.u32 %s722_s13, 7 }
  0x16   : > { %s991_s24 = scalar_select %p806_p11, 1, 0 }
  0x17   : > { %s820_s30 = scalar_lea.hbm %s983_s0, %s501_s27  ;;  %s150_s3 = scalar_lea.vmem [#allocation2], %s486_s26 }
  0x18   : > { %s161_s4 = sshll.u32 %s150_s3, 4  ;;  %p826_p0 = pnand %p521_p13, %p789_p4  ;;  %s822_s4 = int_to_ptr.vmem [resolvable:$true] %s161_s4 }
  0x19   : > { %s147_s6 = scalar_lea.sflag [#allocation3], %s813_s25  ;;  %s580_s7 = scalar_lea.hbm %s820_s30, 128 }
  0x1a   : > { %p581_p3 = scmp.ne.s32.totalorder %s820_s30, %s580_s7  ;;  %p582_p5 = pneg %p826_p0 }
  0x1b   : > { %s585_s16 = scalar_lea.hbm %s983_s0, 256  ;;  %p586_p4 = scmp.lt.u32.totalorder %s820_s30, %s983_s0 }
  0x1c   : > { %p583_p6 = pnand %p582_p5, %p581_p3  ;;  %p587_p10 = scmp.lt.u32.totalorder %s585_s16, %s580_s7 }
  0x1d   : > { %p589_p12 = scmp.lt.u32.totalorder %s580_s7, %s820_s30 }
  0x1e   : > { %p584_p7 = pneg %p583_p6  ;;  %p588_p13 = por %p587_p10, %p586_p4 }
  0x20   : > { %p590_p1 = por %p589_p12, %p588_p13 }
  0x22   : > { %p591_p2 = pnand %p590_p1, %p584_p7 }
  0x24   : > { %594 = shalt.err (!%p591_p2)
}
  0x25   : > { %s595_s20 = scalar_lea.vmem %s822_s4, 128  ;;  %s728_s26 = smov [#allocation2]  }
  0x26   : > { %p596_p3 = scmp.ne.s32.totalorder %s822_s4, %s595_s20  ;;  %s600_s27 = sshll.u32 %s728_s26, 4  ;;  %s601_s27 = int_to_ptr.vmem [resolvable:$false] %s600_s27 }
  0x27   : > { %s602_s28 = scalar_lea.vmem %s601_s27, 256  ;;  %p603_p9 = scmp.lt.s32.totalorder %s822_s4, %s601_s27 }
  0x28   : > { %p598_p6 = pnand %p596_p3, %p582_p5  ;;  %p604_p4 = scmp.lt.s32.totalorder %s602_s28, %s595_s20 }
  0x2a   : > { %p599_p11 = pneg %p598_p6  ;;  %p605_p10 = por %p604_p4, %p603_p9 }
  0x2c   : > { %p606_p12 = pnand %p605_p10, %p599_p11 }
  0x2e   : > { %609 = shalt.err (!%p606_p12)
}
  0x2f   : > { %513 = dma.hbm_to_vmem [thread:$0]  (!%p826_p0), %s820_s30, 128, %s822_s4, %s147_s6  }
  0x30   : > { %p993_p1 = scmp.lt.s32.totalorder %s726_s14, 3  ;;  %p994_p2 = scmp.ge.s32.totalorder %s726_s14, 1 }
  0x31   : > { %s489_s3 = sshll.u32 %s813_s25, 1  ;;  %s502_s7 = sshll.u32 %s722_s13, 5 }
  0x32   : > { %p862_p7 = pnand %p994_p2, %p993_p1  ;;  %s871_s16 = scalar_lea.hbm %s984_s1, %s502_s7 }
  0x33   : > { %s172_s18 = scalar_lea.vmem [#allocation5], %s489_s3  ;;  %s169_s30 = scalar_lea.sflag [#allocation6], %s813_s25 }
  0x34   : > { %s995_s29 = scalar_select %p862_p7, 1, 0 }
  0x35   : > { %s183_s19 = sshll.u32 %s172_s18, 4  ;;  %s610_s4 = scalar_lea.hbm %s871_s16, 32  ;;  %s184_s19 = int_to_ptr.vmem [resolvable:$true] %s183_s19 }
  0x36   : > { %p611_p9 = scmp.ne.s32.totalorder %s871_s16, %s610_s4  ;;  %s615_s26 = scalar_lea.hbm %s984_s1, 64 }
  0x37   : > { %p616_p3 = scmp.lt.u32.totalorder %s871_s16, %s984_s1  ;;  %p617_p6 = scmp.lt.u32.totalorder %s615_s26, %s610_s4 }
  0x38   : > { %p613_p11 = pnand %p611_p9, %p582_p5  ;;  %p619_p10 = scmp.lt.u32.totalorder %s610_s4, %s871_s16 }
  0x39   : > { %p618_p4 = por %p617_p6, %p616_p3 }
  0x3a   : > { %p614_p13 = pneg %p613_p11 }
  0x3b   : > { %p620_p12 = por %p619_p10, %p618_p4 }
  0x3d   : > { %p621_p1 = pnand %p620_p12, %p614_p13 }
  0x3f   : > { %624 = shalt.err (!%p621_p1)
}
  0x40   : > { %s625_s25 = scalar_lea.vmem %s184_s19, 32  ;;  %s729_s3 = smov [#allocation5]  }
  0x41   : > { %p626_p2 = scmp.ne.s32.totalorder %s184_s19, %s625_s25  ;;  %s630_s7 = sshll.u32 %s729_s3, 4  ;;  %s631_s7 = int_to_ptr.vmem [resolvable:$false] %s630_s7 }
  0x42   : > { %s632_s8 = scalar_lea.vmem %s631_s7, 64  ;;  %p633_p8 = scmp.lt.s32.totalorder %s184_s19, %s631_s7 }
  0x43   : > { %p628_p9 = pnand %p626_p2, %p582_p5  ;;  %p634_p7 = scmp.lt.s32.totalorder %s632_s8, %s625_s25 }
  0x45   : > { %p629_p11 = pneg %p628_p9  ;;  %p635_p3 = por %p634_p7, %p633_p8 }
  0x47   : > { %p636_p6 = pnand %p635_p3, %p629_p11 }
  0x49   : > { %639 = shalt.err (!%p636_p6)
}
  0x4a   : > { %516 = dma.hbm_to_vmem [thread:$0]  (!%p826_p0), %s871_s16, 32, %s184_s19, %s169_s30  }
  0x4b   : > { %p996_p13 = scmp.ne.s32.totalorder %s995_s29, 0 }
  0x4c   : > { %s896_s15 = sand.u32 (!%p996_p13), 1, %s710_s10   ;;  %p997_p5 = scmp.ne.s32.totalorder (!%p996_p13), %s989_s21, 0 }
  0x4d   : > { %192 = sbr.rel (%p996_p13) target bundleno = 173 (0xad), region = 28  ;;  %s493_s18 = sshll.u32 (!%p996_p13), %s896_s15, 3 }
  0x4e   : > { %s195_s4 = scalar_lea.sflag (!%p996_p13), [#allocation3], %s896_s15  ;;  %s198_s6 = scalar_lea.vmem (!%p996_p13), [#allocation2], %s493_s18 }
  0x54   : > { %693 = dma.done.wait (%p997_p5), %s195_s4, 128  }
  0x55   : > { %695 = vsyncadd (%p997_p5), %s195_s4, 4294967168  ;;  %s494_s5 = sshll.u32 %s896_s15, 1  ;;  %s204_s29 = scalar_lea.sflag [#allocation6], %s896_s15 }
  0x56   : > { %s207_s16 = scalar_lea.vmem [#allocation5], %s494_s5 }
  0x57   : > { %697 = dma.done.wait (%p997_p5), %s204_s29, 32  }
  0x58   : > { %699 = vsyncadd (%p997_p5), %s204_s29, 4294967264  ;;  %v242_v0 = vlaneseq  ;;  %s914_s19 = scalar_lea.vmem [#allocation7], %s494_s5  ;;  %v730_v2 = vmov 0.0   ;;  %vm254_vm1 = vcmask 1043456   ;;  %v247_v3 = vld [vmem:[%s198_s6] sm:$0xff]  ;;  %s503_s21 = sshll.u32 %s718_s12, 5 }
  0x59   : > { %v252_v4 = vcombine.high %v247_v3, %v247_v3  ;;  %v255_v5 = vsel %vm254_vm1, %v247_v3, -inf  ;;  %v248_v23 = vld [vmem:[%s207_s16] sm:$0x3]  ;;  %v731_v59 = vmov 1966171168   ;;  %s369_s30 = sshll.u32 %s914_s19, 4  ;;  %s931_s27 = scalar_lea.hbm %s985_s2, %s503_s21  ;;  %s933_s30 = int_to_ptr.vmem [resolvable:$true] %s369_s30 }
  0x5a   : > { %vm910_vm0 = vcmp.lt.s32.totalorder %v242_v0, 256  ;;  %v256_v6 = vrot.slane %v255_v5, 4  ;;  %v250_v18 = vshrl.u32 %v242_v0, 7  ;;  %v333_v60 = vunpack.c.l.s4 %v731_v59  ;;  %s354_s28 = scalar_lea.sflag [#allocation4], %s896_s15  ;;  %s640_s25 = scalar_lea.vmem %s933_s30, 32 }
  0x5b   : > { %246 = vst.msk [vmem:[%s914_s19] sm:$0x3] %vm910_vm0, %v730_v2  ;;  %v262_v7 = vsel %vm254_vm1, %v252_v4, -inf  ;;  %p641_p8 = scmp.ne.s32.totalorder %s933_s30, %s640_s25  ;;  %p1000_p0 = scmp.ne.s32.totalorder %s990_s22, 0 }
  0x5c   : > { %v257_v8 = vmax.f32 %v255_v5, %v256_v6  ;;  %v263_v9 = vrot.slane %v262_v7, 4  ;;  %v295_v22 = vsub.s32 0, %v250_v18  ;;  %v299_v25 = vsub.s32 1, %v250_v18  ;;  %s732_s12 = smov [#allocation7]  }
  0x5d   : > { %v334_v2 = vunpack.c.0.s8 %v333_v60  ;;  %p642_p7 = pnand %p641_p8, %p1000_p0  ;;  %s644_s3 = sshll.u32 %s732_s12, 4  ;;  %s645_s3 = int_to_ptr.vmem [resolvable:$false] %s644_s3 }
  0x5e   : > { %v258_v10 = vrot.slane %v257_v8, 2  ;;  %v264_v11 = vmax.f32 %v262_v7, %v263_v9  ;;  %v296_v26 = vrot.slane %v248_v23, %v295_v22  ;;  %v300_v27 = vrot.slane %v248_v23, %v299_v25  ;;  %s646_s7 = scalar_lea.vmem %s645_s3, 64  ;;  %p647_p10 = scmp.lt.s32.totalorder %s933_s30, %s645_s3 }
  0x5f   : > { %v337_v7 = vsub.s32 %v334_v2, %v250_v18  ;;  %p643_p4 = pneg %p642_p7  ;;  %p648_p12 = scmp.lt.s32.totalorder %s646_s7, %s640_s25 }
  0x60   : > { %v259_v12 = vmax.f32 %v257_v8, %v258_v10  ;;  %v265_v13 = vrot.slane %v264_v11, 2  ;;  %vm301_vm2 = vcmp.eq.s32.totalorder %v250_v18, %v296_v26  ;;  %vm302_vm3 = vcmp.eq.s32.totalorder %v250_v18, %v300_v27 }
  0x61   : > { %p649_p1 = por %p648_p12, %p647_p10 }
  0x62   : > { %v260_v14 = vrot.slane %v259_v12, 1  ;;  %v266_v15 = vmax.f32 %v264_v11, %v265_v13  ;;  %v328_v10 = vld [vmem:[%s914_s19] sm:$0x3] }
  0x63   : > { %p650_p2 = pnand %p649_p1, %p643_p4 }
  0x64   : > { %v261_v16 = vmax.f32 %v259_v12, %v260_v14  ;;  %v267_v17 = vrot.slane %v266_v15, 1 }
  0x66   : > { %v268_v19 = vmax.f32 %v266_v15, %v267_v17 }
  0x68   : > { %v271_v20 = vcombine.low %v261_v16, %v268_v19 }
  0x6a   : > { %v273_v21 = vsub.f32 %v247_v3, %v271_v20 }
  0x6c   : > { %v274_v24 = vmul.f32 1.442695, %v273_v21  ;;  %v304_v28 = vcombine.high %v273_v21, %v273_v21  ;;  %v306_v29 = vsel %vm301_vm2, %v273_v21, 0.0 }
  0x6d   : > { %v308_v32 = vsel %vm254_vm1, %v306_v29, 0.0 }
  0x6e   : > { %574 = vpow2.f32 %v274_v24  ;;  %v307_v30 = vsel %vm302_vm3, %v304_v28, 0.0  ;;  %v309_v38 = vrot.slane %v308_v32, 4 }
  0x6f   : > { %v315_v36 = vsel %vm254_vm1, %v307_v30, 0.0 }
  0x70   : > { %v316_v41 = vrot.slane %v315_v36, 4  ;;  %v310_v44 = vadd.f32 %v309_v38, %v308_v32 }
  0x72   : > { %v317_v47 = vadd.f32 %v316_v41, %v315_v36  ;;  %v311_v50 = vrot.slane %v310_v44, 2 }
  0x74   : > { %v318_v53 = vrot.slane %v317_v47, 2  ;;  %v312_v55 = vadd.f32 %v311_v50, %v310_v44 }
  0x76   : > { %v319_v56 = vadd.f32 %v318_v53, %v317_v47  ;;  %v313_v57 = vrot.slane %v312_v55, 1 }
  0x78   : > { %v575_v31 = vpop.eup %574  ;;  %v320_v58 = vrot.slane %v319_v56, 1  ;;  %v314_v61 = vadd.f32 %v313_v57, %v312_v55 }
  0x79   : > { %v277_v33 = vcombine.high %v575_v31, %v575_v31  ;;  %v279_v34 = vsel %vm254_vm1, %v575_v31, 0.0 }
  0x7a   : > { %v280_v35 = vrot.slane %v279_v34, 4  ;;  %v321_v63 = vadd.f32 %v320_v58, %v319_v56 }
  0x7b   : > { %v286_v37 = vsel %vm254_vm1, %v277_v33, 0.0 }
  0x7c   : > { %v281_v39 = vadd.f32 %v280_v35, %v279_v34  ;;  %v287_v40 = vrot.slane %v286_v37, 4 }
  0x7e   : > { %v282_v42 = vrot.slane %v281_v39, 2  ;;  %v288_v43 = vadd.f32 %v287_v40, %v286_v37 }
  0x80   : > { %v283_v45 = vadd.f32 %v282_v42, %v281_v39  ;;  %v289_v46 = vrot.slane %v288_v43, 2 }
  0x82   : > { %v284_v48 = vrot.slane %v283_v45, 1  ;;  %v290_v49 = vadd.f32 %v289_v46, %v288_v43 }
  0x84   : > { %v285_v51 = vadd.f32 %v284_v48, %v283_v45  ;;  %v291_v52 = vrot.slane %v290_v49, 1 }
  0x86   : > { %v292_v54 = vadd.f32 %v291_v52, %v290_v49  ;;  %576 = vlog2.f32 %v285_v51 }
  0x88   : > { %578 = vlog2.f32 %v292_v54 }
  0x90   : > { %v577_v62 = vpop.eup %576 }
  0x91   : > { %v323_v0 = vmul.f32 0.6931472, %v577_v62 }
  0x92   : > { %v579_v3 = vpop.eup %578 }
  0x93   : > { %v325_v4 = vmul.f32 0.6931472, %v579_v3  ;;  %v326_v5 = vsub.f32 %v323_v0, %v314_v61 }
  0x95   : > { %v327_v6 = vsub.f32 %v325_v4, %v321_v63 }
  0x97   : > { %v331_v8 = vcombine.low %v326_v5, %v327_v6 }
  0x99   : > { %v338_v9 = vrot.slane %v331_v8, %v337_v7 }
  0x9b   : > { %v345_v11 = vrot.slane %v338_v9, %v337_v7 }
  0x9d   : > { %v347_v12 = vadd.f32 %v345_v11, %v328_v10 }
  0x9f   : > { %352 = vst.msk [vmem:[%s914_s19] sm:$0x3] %vm910_vm0, %v347_v12 }
  0xa0   : > { %653 = shalt.err (!%p650_p2)
}
  0xa1   : > { %s654_s8 = scalar_lea.hbm %s931_s27, 32  ;;  %s658_s4 = scalar_lea.hbm %s985_s2, 64 }
  0xa2   : > { %p655_p9 = scmp.ne.s32.totalorder %s931_s27, %s654_s8  ;;  %p659_p6 = scmp.lt.u32.totalorder %s931_s27, %s985_s2 }
  0xa3   : > { %p660_p13 = scmp.lt.u32.totalorder %s658_s4, %s654_s8  ;;  %p662_p8 = scmp.lt.u32.totalorder %s654_s8, %s931_s27 }
  0xa4   : > { %p656_p11 = pnand %p655_p9, %p1000_p0 }
  0xa5   : > { %p661_p5 = por %p660_p13, %p659_p6 }
  0xa6   : > { %p657_p3 = pneg %p656_p11 }
  0xa7   : > { %p663_p7 = por %p662_p8, %p661_p5 }
  0xa9   : > { %p664_p4 = pnand %p663_p7, %p657_p3 }
  0xab   : > { %667 = shalt.err (!%p664_p4)
}
  0xac   : > { %508 = dma.vmem_to_hbm [thread:$0]  (%p1000_p0), %s933_s30, 32, %s931_s27, %s354_s28  }
  0xad PF: > { %s381_s29 = sand.u32 1, %s706_s9   ;;  %p1001_p10 = scmp.ne.s32.totalorder %s991_s24, 0 }
  0xae   : > { %p1002_p12 = scmp.ge.s32.totalorder %s726_s14, 2  ;;  %s382_s16 = scalar_lea.sflag [#allocation4], %s381_s29 }
  0xb0   : > { %p518_p1 = pnand %p1002_p12, %p1001_p10 }
  0xb2   : > { %701 = dma.done.wait (!%p518_p1), %s382_s16, 32  }
  0xb3   : > { %703 = vsyncadd (!%p518_p1), %s382_s16, 4294967264  ;;  %s21_s14 = sadd.s32 1, %s726_s14   ;;  %s1003_s9 = smov %s710_s10 }
  0xb4   : > { %p18_p2 = scmp.ge.s32.totalorder %s21_s14, 4   ;;  %s1004_s10 = smov %s714_s11 }
  0xb5   : > { %s1005_s11 = smov %s804_s23  ;;  %s1006_s12 = smov %s722_s13 }
  0xb6   : > { %s1007_s13 = smov %s1009_s17  ;;  %20 = sbr.rel (!%p18_p2) target bundleno = 8 (0x8), region = 90 }
  0xbd   :  { %387 = vsyncpa [#allocation3], 1 }
  0xbe   :  { %389 = vsyncpa [#allocation3 + $0x1], 1 }
  0xbf   :  { %390 = vsyncpa [#allocation6], 1 }
  0xc0   :  { %392 = vsyncpa [#allocation6 + $0x1], 1 }
  0xc1   :  { %393 = vsyncpa [#allocation4], 1 }
  0xc2   :  { %395 = vsyncpa [#allocation4 + $0x1], 1 }

</bundles_post_ra>
